<compile_context>
chip_gen: v7x
topology: tpu7x:2x2x1
jax: 0.10.0
libtpu: 0.0.40
codegen_flags: <defaults>
</compile_context>

<pallas_src>
import jax
import jax.numpy as jnp
from jax.experimental import pallas as pl
from jax.experimental.pallas import tpu as pltpu


def _round_up(a, b):
    return (a + b - 1) // b * b


def _forward_tile(x_ref, w1_ref, b1_ref, w2_ref):
    """relu(x @ W1 + b1) @ W2 for the current batch tile (f32 accumulate).

    b2 is intentionally omitted: BatchNorm's mean subtraction cancels any
    constant per-feature shift exactly, so the output is unchanged and the
    stats accumulation is better conditioned.
    """
    h = jnp.dot(x_ref[...], w1_ref[...], preferred_element_type=jnp.float32)
    h = jnp.maximum(h + b1_ref[...], 0.0)
    return jnp.dot(h, w2_ref[...], preferred_element_type=jnp.float32)


def _make_stats_kernel(batch_size, tile_b, nb_local, needs_mask):
    """Pass 1: per-feature sum / sum-of-squares of z over the batch.

    Grid = (n_split, nb_local); axis 0 is 'parallel' (per-core partial stats on
    v7x), axis 1 is the 'arbitrary' reduction over batch tiles.  The (8, out)
    accumulator block is resident across axis 1 (constant block index) and is
    zero-initialized on the first reduction step.  Row 0 = sum, row 1 = sumsq.
    """

    def stats_kernel(x_ref, w1_ref, b1_ref, w2_ref, stat_ref):
        i = pl.program_id(1)

        @pl.when(i == 0)
        def _():
            stat_ref[...] = jnp.zeros_like(stat_ref)

        z = _forward_tile(x_ref, w1_ref, b1_ref, w2_ref)  # (tile_b, out) f32

        if needs_mask:
            # Only emitted when the batch was padded: zero padded rows with a
            # cheap (tile_b, 1) sublane mask multiply.
            s = pl.program_id(0)
            row = ((s * nb_local + i) * tile_b
                   + jax.lax.broadcasted_iota(jnp.int32, (tile_b, 1), 0))
            z = z * (row < batch_size).astype(z.dtype)

        stat_ref[0:1, :] = stat_ref[0:1, :] + jnp.sum(z, axis=0, keepdims=True)
        stat_ref[1:2, :] = stat_ref[1:2, :] + jnp.sum(z * z, axis=0, keepdims=True)

    return stats_kernel


def _norm_kernel(x_ref, w1_ref, b1_ref, w2_ref, scale_ref, shift_ref, o_ref):
    """Pass 2: recompute z per tile and apply the folded BN affine.

    Recomputing z is cheaper than round-tripping it through HBM (the matmuls
    are tiny; z would cost an extra write+read).  Every tile is independent ->
    'parallel' grid axis (megacore-splittable on v7x).
    """
    z = _forward_tile(x_ref, w1_ref, b1_ref, w2_ref)
    o_ref[...] = (z * scale_ref[...] + shift_ref[...]).astype(o_ref.dtype)


def prepare_params(w1, b1, w2, b2, gamma, beta):
    """One-time parameter prep (do at init, not per call): transpose to
    [in, out] layout; no lane padding.  b2 is accepted for API parity with the
    PyTorch module but is not needed (it cancels under BatchNorm)."""
    del b2
    hidden = w1.shape[0]
    out_size = w2.shape[0]
    return dict(
        w1_t=jnp.asarray(w1.T, jnp.float32),                    # [In, Hidden]
        b1=jnp.asarray(b1, jnp.float32).reshape(1, hidden),
        w2_t=jnp.asarray(w2.T, jnp.float32),                    # [Hidden, Out]
        gamma=jnp.asarray(gamma, jnp.float32).reshape(1, out_size),
        beta=jnp.asarray(beta, jnp.float32).reshape(1, out_size),
    )


def simple_fully_connected(x, params, *, block_b=8192, eps=1e-5):
    """x: [B, In] (f32, or bf16 to halve the dominant x HBM read).
    params: output of prepare_params.  Returns [B, Out] in x.dtype."""
    w1_t, b1_2d, w2_t = params["w1_t"], params["b1"], params["w2_t"]
    gamma_2d, beta_2d = params["gamma"], params["beta"]

    B, in_size = x.shape
    hidden = w1_t.shape[1]
    out_size = w2_t.shape[1]

    # ---- Batch tiling --------------------------------------------------
    b_ceil = _round_up(B, 8)
    tb = min(_round_up(block_b, 8), b_ceil)
    # Keep >= 2 batch tiles when the batch is big enough so the 'parallel'
    # grid axes can actually split across both TensorCores on v7x.
    if tb == b_ceil and b_ceil >= 1024:
        tb = _round_up(b_ceil // 2, 8)
    nb = -(-b_ceil // tb)                 # number of batch tiles
    n_split = 2 if nb >= 2 else 1        # per-core partial-stats splits
    nb_local = -(-nb // n_split)
    b_pad = n_split * nb_local * tb
    if b_pad != B:
        x = jnp.pad(x, ((0, b_pad - B), (0, 0)))
    needs_mask = b_pad != B

    vmem = 32 * 1024 * 1024
    cp_stats = pltpu.CompilerParams(
        dimension_semantics=("parallel", "arbitrary"), vmem_limit_bytes=vmem)
    cp_norm = pltpu.CompilerParams(
        dimension_semantics=("parallel",), vmem_limit_bytes=vmem)

    # ---- Pass 1: per-feature sum / sumsq of z over the batch ------------
    # Weights/biases use constant index_maps -> DMA'd once, VMEM-resident.
    stats = pl.pallas_call(
        _make_stats_kernel(B, tb, nb_local, needs_mask),
        out_shape=jax.ShapeDtypeStruct((n_split * 8, out_size), jnp.float32),
        grid=(n_split, nb_local),
        in_specs=[
            pl.BlockSpec((tb, in_size), lambda s, i: (s * nb_local + i, 0)),
            pl.BlockSpec((in_size, hidden), lambda s, i: (0, 0)),
            pl.BlockSpec((1, hidden), lambda s, i: (0, 0)),
            pl.BlockSpec((hidden, out_size), lambda s, i: (0, 0)),
        ],
        out_specs=pl.BlockSpec((8, out_size), lambda s, i: (s, 0)),
        compiler_params=cp_stats,
    )(x, w1_t, b1_2d, w2_t)

    # Combine per-split partials and fold BN into a per-feature scale/shift.
    # These are a handful of (1, out_size) XLA ops -- negligible.
    inv_n = 1.0 / float(B)
    zsum = stats[0::8].sum(axis=0, keepdims=True)
    zsumsq = stats[1::8].sum(axis=0, keepdims=True)
    mean = zsum * inv_n
    var = jnp.maximum(zsumsq * inv_n - mean * mean, 0.0)   # biased batch variance
    scale = gamma_2d * jax.lax.rsqrt(var + eps)
    shift = beta_2d - mean * scale

    # ---- Pass 2: recompute z per tile, apply BN; narrow (out_size) store --
    out = pl.pallas_call(
        _norm_kernel,
        out_shape=jax.ShapeDtypeStruct((b_pad, out_size), x.dtype),
        grid=(b_pad // tb,),
        in_specs=[
            pl.BlockSpec((tb, in_size), lambda i: (i, 0)),
            pl.BlockSpec((in_size, hidden), lambda i: (0, 0)),
            pl.BlockSpec((1, hidden), lambda i: (0, 0)),
            pl.BlockSpec((hidden, out_size), lambda i: (0, 0)),
            pl.BlockSpec((1, out_size), lambda i: (0, 0)),
            pl.BlockSpec((1, out_size), lambda i: (0, 0)),
        ],
        out_specs=pl.BlockSpec((tb, out_size), lambda i: (i, 0)),
        compiler_params=cp_norm,
    )(x, w1_t, b1_2d, w2_t, scale, shift)

    return out[:B] if b_pad != B else out


if __name__ == "__main__":
    batch = 8
    input_size = 32
    hidden_size = 32
    output_size = 16

    key = jax.random.PRNGKey(0)
    kx, kw1, kb1, kw2, kb2 = jax.random.split(key, 5)

    x = jax.random.normal(kx, (batch, input_size), dtype=jnp.float32)

    # Deterministic parameter init (uniform, Linear-style bounds).
    bound1 = 1.0 / (input_size ** 0.5)
    w1 = jax.random.uniform(kw1, (hidden_size, input_size), jnp.float32, -bound1, bound1)
    b1 = jax.random.uniform(kb1, (hidden_size,), jnp.float32, -bound1, bound1)

    bound2 = 1.0 / (hidden_size ** 0.5)
    w2 = jax.random.uniform(kw2, (output_size, hidden_size), jnp.float32, -bound2, bound2)
    b2 = jax.random.uniform(kb2, (output_size,), jnp.float32, -bound2, bound2)

    # BatchNorm1d affine params at their PyTorch defaults.
    gamma = jnp.ones((output_size,), dtype=jnp.float32)
    beta = jnp.zeros((output_size,), dtype=jnp.float32)

    params = prepare_params(w1, b1, w2, b2, gamma, beta)   # one-time prep
    out = simple_fully_connected(x, params)
    jax.block_until_ready(out)

    # Reference check in plain JAX (same math, PyTorch training-mode BN).
    h_ref = jnp.maximum(x @ w1.T + b1, 0.0)
    y_ref = h_ref @ w2.T + b2
    m = jnp.mean(y_ref, axis=0, keepdims=True)
    v = jnp.mean((y_ref - m) ** 2, axis=0, keepdims=True)
    ref = (y_ref - m) / jnp.sqrt(v + 1e-5) * gamma + beta
    assert out.shape == (batch, output_size)
    assert jnp.allclose(out, ref, atol=1e-4, rtol=1e-4), float(jnp.max(jnp.abs(out - ref)))

    print("KERNEL_OK")
</pallas_src>

<mosaic_0001>
module attributes {stable_mosaic.version = 11 : i64} {
  func.func @stats_kernel(%arg0: i32, %arg1: i32, %arg2: memref<8x32xf32, #tpu.memory_space<vmem>>, %arg3: memref<32x32xf32, #tpu.memory_space<vmem>>, %arg4: memref<1x32xf32, #tpu.memory_space<vmem>>, %arg5: memref<32x16xf32, #tpu.memory_space<vmem>>, %arg6: memref<8x16xf32, #tpu.memory_space<vmem>>) attributes {dimension_semantics = [#tpu.dimension_semantics<parallel>, #tpu.dimension_semantics<arbitrary>], iteration_bounds = array<i64: 1, 1>, scalar_prefetch = 0 : i64, scratch_operands = 0 : i64, tpu.core_type = #tpu.core_type<tc>, window_params = [{transform_indices = @transform_0, window_bounds = array<i64: 8, 32>}, {pipeline_mode = #tpu.pipeline_mode<synchronous>, transform_indices = @transform_1, window_bounds = array<i64: 32, 32>}, {pipeline_mode = #tpu.pipeline_mode<synchronous>, transform_indices = @transform_2, window_bounds = array<i64: 1, 32>}, {pipeline_mode = #tpu.pipeline_mode<synchronous>, transform_indices = @transform_3, window_bounds = array<i64: 32, 16>}, {transform_indices = @transform_4, window_bounds = array<i64: 8, 16>}]} {
    %c0_i32 = arith.constant 0 : i32
    %0 = arith.cmpi eq, %arg1, %c0_i32 : i32
    %1 = arith.extui %0 : i1 to i32
    %c0_i32_0 = arith.constant 0 : i32
    %2 = arith.cmpi ne, %1, %c0_i32_0 : i32
    scf.if %2 {
      %cst_19 = arith.constant 0.000000e+00 : f32
      %24 = vector.broadcast %cst_19 : f32 to vector<8x16xf32>
      %c0_20 = arith.constant 0 : index
      %c0_21 = arith.constant 0 : index
      %25 = vector.load %arg6[%c0_20, %c0_21] : memref<8x16xf32, #tpu.memory_space<vmem>>, vector<8x16xf32>
      tpu.vector_store %arg6[%c0_20, %c0_21], %24 {strides = array<i32>} : memref<8x16xf32, #tpu.memory_space<vmem>>, vector<8x16xf32>,
    } else {
    }
    %c0 = arith.constant 0 : index
    %c0_1 = arith.constant 0 : index
    %3 = vector.load %arg2[%c0, %c0_1] : memref<8x32xf32, #tpu.memory_space<vmem>>, vector<8x32xf32>
    %c0_2 = arith.constant 0 : index
    %c0_3 = arith.constant 0 : index
    %4 = vector.load %arg3[%c0_2, %c0_3] : memref<32x32xf32, #tpu.memory_space<vmem>>, vector<32x32xf32>
    %cst = arith.constant dense<0.000000e+00> : vector<8x32xf32>
    %5 = tpu.matmul %3, %4, %cst {dimension_numbers = #tpu.dot_dimension_numbers<[1], [0], [0], [1], [0, 0, 1, 1], [], []>} : vector<8x32xf32>, vector<32x32xf32>, vector<8x32xf32> -> vector<8x32xf32>
    %c0_4 = arith.constant 0 : index
    %c0_5 = arith.constant 0 : index
    %6 = vector.load %arg4[%c0_4, %c0_5] : memref<1x32xf32, #tpu.memory_space<vmem>>, vector<1x32xf32>
    %7 = vector.broadcast %6 : vector<1x32xf32> to vector<8x32xf32>
    %8 = arith.addf %5, %7 : vector<8x32xf32>
    %cst_6 = arith.constant 0.000000e+00 : f32
    %9 = vector.broadcast %cst_6 : f32 to vector<8x32xf32>
    %10 = arith.maximumf %8, %9 : vector<8x32xf32>
    %c0_7 = arith.constant 0 : index
    %c0_8 = arith.constant 0 : index
    %11 = vector.load %arg5[%c0_7, %c0_8] : memref<32x16xf32, #tpu.memory_space<vmem>>, vector<32x16xf32>
    %cst_9 = arith.constant dense<0.000000e+00> : vector<8x16xf32>
    %12 = tpu.matmul %10, %11, %cst_9 {dimension_numbers = #tpu.dot_dimension_numbers<[1], [0], [0], [1], [0, 0, 1, 1], [], []>} : vector<8x32xf32>, vector<32x16xf32>, vector<8x16xf32> -> vector<8x16xf32>
    %c0_10 = arith.constant 0 : index
    %c0_11 = arith.constant 0 : index
    %13 = vector.load %arg6[%c0_10, %c0_11] : memref<8x16xf32, #tpu.memory_space<vmem>>, vector<1x16xf32>
    %cst_12 = arith.constant dense<0.000000e+00> : vector<16xf32>
    %14 = vector.multi_reduction <add>, %12, %cst_12 [0] : vector<8x16xf32> to vector<16xf32>
    %15 = vector.shape_cast %14 : vector<16xf32> to vector<1x16xf32>
    %16 = arith.addf %13, %15 : vector<1x16xf32>
    %c0_13 = arith.constant 0 : index
    %c0_14 = arith.constant 0 : index
    %17 = vector.load %arg6[%c0_13, %c0_14] : memref<8x16xf32, #tpu.memory_space<vmem>>, vector<1x16xf32>
    tpu.vector_store %arg6[%c0_13, %c0_14], %16 {strides = array<i32>} : memref<8x16xf32, #tpu.memory_space<vmem>>, vector<1x16xf32>,
    %c1 = arith.constant 1 : index
    %c0_15 = arith.constant 0 : index
    %18 = vector.load %arg6[%c1, %c0_15] : memref<8x16xf32, #tpu.memory_space<vmem>>, vector<1x16xf32>
    %19 = arith.mulf %12, %12 : vector<8x16xf32>
    %cst_16 = arith.constant dense<0.000000e+00> : vector<16xf32>
    %20 = vector.multi_reduction <add>, %19, %cst_16 [0] : vector<8x16xf32> to vector<16xf32>
    %21 = vector.shape_cast %20 : vector<16xf32> to vector<1x16xf32>
    %22 = arith.addf %18, %21 : vector<1x16xf32>
    %c1_17 = arith.constant 1 : index
    %c0_18 = arith.constant 0 : index
    %23 = vector.load %arg6[%c1_17, %c0_18] : memref<8x16xf32, #tpu.memory_space<vmem>>, vector<1x16xf32>
    tpu.vector_store %arg6[%c1_17, %c0_18], %22 {strides = array<i32>} : memref<8x16xf32, #tpu.memory_space<vmem>>, vector<1x16xf32>,
    return
  }
  func.func @transform_0(%arg0: i32, %arg1: i32) -> (i32, i32) {
    %c1_i32 = arith.constant 1 : i32
    %0 = arith.muli %arg0, %c1_i32 : i32
    %1 = arith.addi %0, %arg1 : i32
    %c0_i32 = arith.constant 0 : i32
    %c0_i32_0 = arith.constant 0 : i32
    return %1, %c0_i32 : i32, i32
  }
  func.func @transform_1(%arg0: i32, %arg1: i32) -> (i32, i32) {
    %c0_i32 = arith.constant 0 : i32
    %c0_i32_0 = arith.constant 0 : i32
    %c0_i32_1 = arith.constant 0 : i32
    return %c0_i32, %c0_i32_0 : i32, i32
  }
  func.func @transform_2(%arg0: i32, %arg1: i32) -> (i32, i32) {
    %c0_i32 = arith.constant 0 : i32
    %c0_i32_0 = arith.constant 0 : i32
    %c0_i32_1 = arith.constant 0 : i32
    return %c0_i32, %c0_i32_0 : i32, i32
  }
  func.func @transform_3(%arg0: i32, %arg1: i32) -> (i32, i32) {
    %c0_i32 = arith.constant 0 : i32
    %c0_i32_0 = arith.constant 0 : i32
    %c0_i32_1 = arith.constant 0 : i32
    return %c0_i32, %c0_i32_0 : i32, i32
  }
  func.func @transform_4(%arg0: i32, %arg1: i32) -> (i32, i32) {
    %c0_i32 = arith.constant 0 : i32
    %c0_i32_0 = arith.constant 0 : i32
    return %arg0, %c0_i32 : i32, i32
  }
}

</mosaic_0001>

<bundles_post_ra>
// kernel: tpu_custom_call.1
= control target key start
LH: loop header
LB: loop body
LE: loop exit
PB: predicated region body
PF: predicated region fallthrough
CT: control target
= control target key end

     0   :  { %vm39_vm0 = vcmask 130048   ;;  %v323_v3 = vmov 0.0|0.0   ;;  %v324_v6 = vmov 0.0   ;;  %vm325_vm1 = vmmov 0   ;;  %s397_s0 = inlined_call_operand.vmem [shape: f32[8,32], index: 0, kind: input, shape index: {}]   ;;  %s398_s1 = inlined_call_operand.vmem [shape: f32[32,32], index: 1, kind: input, shape index: {}]   ;;  %s399_s2 = inlined_call_operand.vmem [shape: f32[1,32], index: 2, kind: input, shape index: {}]   ;;  %s400_s3 = inlined_call_operand.vmem [shape: f32[32,16], index: 3, kind: input, shape index: {}]   ;;  %s401_s4 = inlined_call_operand.hbm [shape: f32[8,16], index: 4, kind: output, shape index: {}]  }
   0x1   :  { %v42_v0 = vld [vmem:[%s398_s1] sm:$0xff]  ;;  %v43_v1 = vld [vmem:[%s398_s1 + $0x8] sm:$0xff]  ;;  %v44_v2 = vld [vmem:[%s398_s1 + $0x10] sm:$0xff]  ;;  %283 = vmatprep.subr.bf16.mxu0 %v323_v3  ;;  %40 = vst.msk [vmem:[#allocation2] sm:$0xff] %vm39_vm0, %v324_v6  ;;  %289 = vmatprep.subr.bf16.mxu1 %v323_v3 }
   0x2   :  { %v284_v4 = vpack.c.bf16 %v43_v1, %v42_v0  ;;  %v45_v5 = vld [vmem:[%s398_s1 + $0x18] sm:$0xff]  ;;  %v128_v7 = vld [vmem:[%s400_s3] sm:$0xff]  ;;  %269 = vmatprep.mubr.msk.f32.mxu0 %vm325_vm1, %v324_v6  ;;  %v129_v8 = vld [vmem:[%s400_s3 + $0x8] sm:$0xff]  ;;  %280 = vmatprep.mubr.msk.f32.mxu1 %vm325_vm1, %v324_v6 }
   0x3   :  { %9 = vsyncpa [#allocation3], 0  ;;  %v287_v9 = vpack.c.bf16 %v45_v5, %v44_v2  ;;  %v290_v10 = vpack.c.bf16 %v129_v8, %v128_v7  ;;  %v41_v11 = vld [vmem:[%s397_s0] sm:$0xff]  ;;  %vm53_vm2 = vcmask 261120   ;;  %v130_v12 = vld [vmem:[%s400_s3 + $0x10] sm:$0xff]  ;;  %vm215_vm3 = vcmask 122880  }
   0x4   :  { %285 = vmatpush3.bf16.msra.mxu0 %v284_v4  ;;  %v131_v13 = vld [vmem:[%s400_s3 + $0x18] sm:$0xff]  ;;  %v248_v15 = vld [vmem:[%s399_s2] ss:$0 sm:$0xff]  ;;  %s326_s0 = smov [#allocation2]  }
   0x5   :  { %286 = vmatprep.subr.bf16.mxu0 %v323_v3  ;;  %291 = vmatpush3.bf16.msra.mxu1 %v290_v10  ;;  %v293_v14 = vpack.c.bf16 %v131_v13, %v130_v12  ;;  %s234_s2 = sshll.u32 %s326_s0, 4  ;;  %s235_s2 = int_to_ptr.vmem [resolvable:$true] %s234_s2 }
   0x6   :  { %292 = vmatprep.subr.bf16.mxu1 %v323_v3  ;;  %s299_s3 = scalar_lea.vmem %s235_s2, 128  ;;  %p304_p1 = scmp.lt.s32.totalorder %s235_s2, %s235_s2 }
   0x7   :  { %p300_p0 = scmp.ne.s32.totalorder %s235_s2, %s299_s3  ;;  %p305_p2 = scmp.lt.s32.totalorder %s299_s3, %s299_s3 }
   0x8   :  { %288 = vmatpush3.bf16.msra.mxu0 %v287_v9  ;;  %v205_v34 = vld [vmem:[#allocation2] sm:$0x1]  ;;  %v217_v37 = vld [vmem:[#allocation2 + $0x1] sm:$0x1] }
   0x9   :  { %294 = vmatpush3.bf16.msra.mxu1 %v293_v14  ;;  %p306_p3 = por %p305_p2, %p304_p1 }
   0xb   :  { %270 = vmatmul.mubr.msk.f32.vlgmr.msra.gmra.mrb[0].mxu0 %vm53_vm2, %v41_v11  ;;  %p307_p4 = pnand %p306_p3, %p300_p0 }
  0xde   :  { %v123_v16 = vpop.f32.mrb[0].mxu0 }
  0xdf   :  { %v124_v17 = vadd.f32 %v248_v15, %v123_v16  ;;  %v271_v18 = vpop.f32.mrb[1].mxu0 }
  0xe1   :  { %v127_v19 = vmax.f32 %v124_v17, 0.0 }
  0xe3   :  { %281 = vmatmul.mubr.msk.f32.vlgmr.msra.gmra.mrb[0].mxu1 %vm53_vm2, %v127_v19 }
 0x1b6   :  { %v201_v20 = vpop.f32.mrb[0].mxu1 }
 0x1b7   :  { %v207_v21 = vsel %vm39_vm0, %v201_v20, 0.0  ;;  %v218_v22 = vmul.f32 %v201_v20, %v201_v20  ;;  %v282_v23 = vpop.f32.mrb[1].mxu1 }
 0x1b8   :  { %v208_v24 = vrot.slane %v207_v21, 4 }
 0x1b9   :  { %v219_v25 = vsel %vm39_vm0, %v218_v22, 0.0 }
 0x1ba   :  { %v209_v26 = vadd.f32 %v208_v24, %v207_v21  ;;  %v220_v27 = vrot.slane %v219_v25, 4 }
 0x1bc   :  { %v210_v28 = vrot.slane %v209_v26, 2  ;;  %v221_v29 = vadd.f32 %v220_v27, %v219_v25 }
 0x1be   :  { %v211_v30 = vadd.f32 %v210_v28, %v209_v26  ;;  %v222_v31 = vrot.slane %v221_v29, 2 }
 0x1c0   :  { %v212_v32 = vrot.slane %v211_v30, 1  ;;  %v223_v33 = vadd.f32 %v222_v31, %v221_v29 }
 0x1c2   :  { %v213_v35 = vadd.f32 %v212_v32, %v211_v30  ;;  %v224_v36 = vrot.slane %v223_v33, 1 }
 0x1c4   :  { %v214_v38 = vadd.f32 %v213_v35, %v205_v34  ;;  %v225_v39 = vadd.f32 %v224_v36, %v223_v33 }
 0x1c6   :  { %216 = vst.msk [vmem:[#allocation2] sm:$0x1] %vm215_vm3, %v214_v38  ;;  %v226_v40 = vadd.f32 %v225_v39, %v217_v37 }
 0x1c8   :  { %227 = vst.msk [vmem:[#allocation2 + $0x1] sm:$0x1] %vm215_vm3, %v226_v40 }
 0x1c9   :  { %310 = shalt.err (!%p307_p4)
}
 0x1ca   :  { %s311_s10 = scalar_lea.hbm %s401_s4, 128 }
 0x1cb   :  { %p312_p5 = scmp.ne.s32.totalorder %s401_s4, %s311_s10  ;;  %p315_p6 = scmp.lt.u32.totalorder %s311_s10, %s401_s4 }
 0x1cd   :  { %p317_p7 = pnand %p315_p6, %p312_p5 }
 0x1cf   :  { %320 = shalt.err (!%p317_p7)
}
 0x1d0   :  { %237 = dma.vmem_to_hbm [thread:$0]  %s235_s2, 128, %s401_s4, [#allocation3]  }
 0x1d1   :  { %321 = dma.done.wait [#allocation3], 128  }
 0x1d2   :  { %322 = vsyncadd [#allocation3], 4294967168 }
 0x1d3   :  { %241 = vsyncpa [#allocation3], 1 }

</bundles_post_ra>
